<compile_context>
chip_gen: v7x
topology: tpu7x:2x2x1
jax: 0.10.0
libtpu: 0.0.40
codegen_flags: <defaults>
</compile_context>

<pallas_src>
import jax
import jax.numpy as jnp
from jax import lax
from jax.experimental import pallas as pl
from jax.experimental.pallas import tpu as pltpu


def _global_attn_kernel(enc_ref, w_ref, b_ref, out_ref):
    # enc_ref: (TB, S, H) VMEM block of encoder outputs
    # w_ref:   (1, 1, H)  VMEM, lane-dense attention weight vector
    # b_ref:   (1,)       SMEM scalar bias
    # out_ref: (TB, H)
    enc = enc_ref[...]                                   # (TB, S, H), input dtype
    tb, _, h = enc.shape
    bias = b_ref[0]                                      # f32 scalar (SMEM)

    # Energies via a batched MXU contraction over H (no block-sized VPU temp):
    # (TB,1,H) x (TB,S,H) -> (TB,1,S), lane-dense over the sequence axis.
    w_b = jnp.broadcast_to(w_ref[...], (tb, 1, h))       # tiny, hoisted once
    e = jnp.einsum(
        "boh,bsh->bos", w_b, enc,
        preferred_element_type=jnp.float32,
        precision=lax.Precision.HIGHEST) + bias          # (TB, 1, S), f32

    # Numerically-stable softmax over S; normalization deferred to the output.
    m = jnp.max(e, axis=-1, keepdims=True)               # (TB, 1, 1)
    p = jnp.exp(e - m)                                   # (TB, 1, S)
    denom = jnp.sum(p, axis=-1, keepdims=True)           # (TB, 1, 1)

    # Weighted sum over S as a batched MXU matmul on the UNNORMALIZED weights.
    acc = jnp.einsum(
        "bqs,bsh->bqh", p.astype(enc.dtype), enc,
        preferred_element_type=jnp.float32,
        precision=lax.Precision.HIGHEST)                 # (TB, 1, H), f32

    # Exact rescale on the small (TB, H) output (fully hidden under the DMA).
    out = acc[:, 0, :] / denom[:, 0, :]                  # (TB, H)
    out_ref[...] = out.astype(out_ref.dtype)


def _vmem_capacity_bytes(default=64 * 1024 * 1024):
    """Physical VMEM capacity of the local chip; conservative fallback 64 MiB."""
    try:
        return int(pltpu.get_tpu_info().vmem_capacity_bytes)
    except Exception:  # not on TPU / API unavailable -> be conservative (v7x-sized)
        return default


def _pick_batch_tile(B, S, H, itemsize, target_block_bytes, *, min_grid_steps=8):
    """Batch tile TB for (TB, S, H) input blocks.

    Rules (in priority order):
      * TB == B (full dim) when everything fits one block -> trivially legal.
      * Otherwise TB is a multiple of 8 so the (TB, H) output block satisfies the
        (8,128)/full-dim rule and stores are unmasked.
      * Blocks target ~target_block_bytes; when B is large (>= 8*min_grid_steps)
        prefer >= min_grid_steps grid steps so the pipeline overlaps and both
        v7x TensorCores get several iterations each.
      * grid = cdiv(B, TB): a partial last block is fine (per-row math is
        independent, padded rows cannot contaminate real rows).
    """
    row_bytes = max(1, S * H * itemsize)
    tb = max(1, target_block_bytes // row_bytes)
    if tb >= B:
        return B
    if B >= 8 * min_grid_steps:
        # Keep >= min_grid_steps steps before maximizing block size.
        tb = min(tb, pl.cdiv(B, min_grid_steps))
    tb = max(8, (tb // 8) * 8)   # sublane-align; never below one 8-row granule
    return min(tb, B)


def global_attn_manning2015(encoder_outputs, w, b, *, target_block_bytes=None):
    """encoder_outputs: (B, S, H); w: (H, 1); b: (1, 1). Returns (B, H)."""
    B, S, H = encoder_outputs.shape
    dtype = encoder_outputs.dtype

    vmem_cap = _vmem_capacity_bytes()
    if target_block_bytes is None:
        # ~VMEM/8 per block (double-buffered input stays ~1/4 of VMEM):
        # 8 MiB on v7x (64 MiB VMEM), 16 MiB on v5e/v6e (128 MiB VMEM).
        target_block_bytes = max(4 << 20, min(16 << 20, vmem_cap // 8))

    tb = _pick_batch_tile(B, S, H, dtype.itemsize, target_block_bytes)
    grid = (pl.cdiv(B, tb),)

    # VMEM budget from the actual buffer plan: 2x double-buffered input block
    # plus tiny weight/output blocks and margin; capped below physical VMEM.
    block_bytes = tb * S * H * dtype.itemsize
    vmem_limit = int(min(vmem_cap - (4 << 20),
                         max(32 << 20, 2 * block_bytes + (8 << 20))))

    w_row = jnp.reshape(w, (1, 1, H)).astype(dtype)   # lane-dense attention vector
    b_s = jnp.reshape(b, (1,)).astype(jnp.float32)    # scalar bias -> SMEM

    return pl.pallas_call(
        _global_attn_kernel,
        out_shape=jax.ShapeDtypeStruct((B, H), dtype),
        grid_spec=pltpu.PrefetchScalarGridSpec(
            num_scalar_prefetch=0,
            grid=grid,
            in_specs=[
                pl.BlockSpec((tb, S, H), lambda i: (i, 0, 0)),
                pl.BlockSpec((1, 1, H), lambda i: (0, 0, 0)),
                pl.BlockSpec(memory_space=pltpu.MemorySpace.SMEM),
            ],
            out_specs=pl.BlockSpec((tb, H), lambda i: (i, 0)),
        ),
        compiler_params=pltpu.CompilerParams(
            dimension_semantics=("parallel",),
            vmem_limit_bytes=vmem_limit,
        ),
    )(encoder_outputs, w_row, b_s)


def _reference(encoder_outputs, w, b):
    # Pure-JAX reference mirroring the PyTorch module (all exact f32 elementwise).
    e = jnp.sum(encoder_outputs * w[:, 0], axis=-1, keepdims=True) + b[0, 0]  # (B,S,1)
    scores = jax.nn.softmax(e, axis=1)                                        # (B,S,1)
    weighted = scores * encoder_outputs                                       # (B,S,H)
    return jnp.sum(weighted, axis=1)                                          # (B,H)


if __name__ == "__main__":
    key = jax.random.PRNGKey(0)
    B, S, H = 2, 8, 32

    k_enc, k_w, k_b = jax.random.split(key, 3)
    encoder_outputs = jax.random.normal(k_enc, (B, S, H), dtype=jnp.float32)

    # Deterministic parameter init: mimic nn.Linear's uniform(-1/sqrt(H), 1/sqrt(H)).
    bound = 1.0 / (H ** 0.5)
    w = jax.random.uniform(k_w, (H, 1), dtype=jnp.float32, minval=-bound, maxval=bound)
    b = jax.random.uniform(k_b, (1, 1), dtype=jnp.float32, minval=-bound, maxval=bound)

    out = global_attn_manning2015(encoder_outputs, w, b)
    out = jax.block_until_ready(out)

    ref = _reference(encoder_outputs, w, b)
    assert out.shape == (B, H)
    # Exact divide + HIGHEST-precision MXU contractions -> tight tolerance.
    assert jnp.allclose(out, ref, atol=1e-4, rtol=1e-4), "mismatch vs reference"

    print("KERNEL_OK")
</pallas_src>

<mosaic_0001>
module attributes {stable_mosaic.version = 11 : i64} {
  func.func @_global_attn_kernel(%arg0: i32, %arg1: memref<2x8x32xf32, #tpu.memory_space<vmem>>, %arg2: memref<1x1x32xf32, #tpu.memory_space<vmem>>, %arg3: memref<1xf32, #tpu.memory_space<smem>>, %arg4: memref<2x32xf32, #tpu.memory_space<vmem>>) attributes {dimension_semantics = [#tpu.dimension_semantics<parallel>], iteration_bounds = array<i64: 1>, scalar_prefetch = 0 : i64, scratch_operands = 0 : i64, tpu.core_type = #tpu.core_type<tc>, window_params = [{transform_indices = @transform_0, window_bounds = array<i64: 2, 8, 32>}, {pipeline_mode = #tpu.pipeline_mode<synchronous>, transform_indices = @transform_1, window_bounds = array<i64: 1, 1, 32>}, {transform_indices = @transform_2, window_bounds = array<i64: 1>}, {transform_indices = @transform_3, window_bounds = array<i64: 2, 32>}]} {
    %c0 = arith.constant 0 : index
    %c0_0 = arith.constant 0 : index
    %c0_1 = arith.constant 0 : index
    %0 = vector.load %arg1[%c0, %c0_0, %c0_1] : memref<2x8x32xf32, #tpu.memory_space<vmem>>, vector<2x8x32xf32>
    %c0_2 = arith.constant 0 : index
    %1 = memref.load %arg3[%c0_2] : memref<1xf32, #tpu.memory_space<smem>>
    %c0_3 = arith.constant 0 : index
    %c0_4 = arith.constant 0 : index
    %c0_5 = arith.constant 0 : index
    %2 = vector.load %arg2[%c0_3, %c0_4, %c0_5] : memref<1x1x32xf32, #tpu.memory_space<vmem>>, vector<1x1x32xf32>
    %3 = vector.shape_cast %2 : vector<1x1x32xf32> to vector<1x1x32xf32>
    %4 = vector.broadcast %3 : vector<1x1x32xf32> to vector<2x1x32xf32>
    "tpu.trace_start"() <{level = 10 : i32, message = "boh,bsh->bos"}> : () -> ()
    %cst = arith.constant dense<0.000000e+00> : vector<2x1x8xf32>
    %5 = tpu.matmul %4, %0, %cst {dimension_numbers = #tpu.dot_dimension_numbers<[2], [2], [1], [1], [0, 0, 0, 1, 1, 1], [0], [0]>, precision = #tpu.contract_precision<fp32>} : vector<2x1x32xf32>, vector<2x8x32xf32>, vector<2x1x8xf32> -> vector<2x1x8xf32>
    "tpu.trace_stop"() : () -> ()
    %6 = vector.broadcast %1 : f32 to vector<2x1x8xf32>
    %7 = arith.addf %5, %6 : vector<2x1x8xf32>
    %cst_6 = arith.constant dense<0xFF800000> : vector<2x1xf32>
    %8 = vector.multi_reduction <maximumf>, %7, %cst_6 [2] : vector<2x1x8xf32> to vector<2x1xf32>
    %9 = vector.shape_cast %8 : vector<2x1xf32> to vector<2x1x1xf32>
    %10 = vector.broadcast %9 : vector<2x1x1xf32> to vector<2x1x8xf32>
    %11 = arith.subf %7, %10 : vector<2x1x8xf32>
    %12 = math.exp %11 : vector<2x1x8xf32>
    %cst_7 = arith.constant dense<0.000000e+00> : vector<2x1xf32>
    %13 = vector.multi_reduction <add>, %12, %cst_7 [2] : vector<2x1x8xf32> to vector<2x1xf32>
    %14 = vector.shape_cast %13 : vector<2x1xf32> to vector<2x1x1xf32>
    "tpu.trace_start"() <{level = 10 : i32, message = "bqs,bsh->bqh"}> : () -> ()
    %cst_8 = arith.constant dense<0.000000e+00> : vector<2x1x32xf32>
    %15 = tpu.matmul %12, %0, %cst_8 {dimension_numbers = #tpu.dot_dimension_numbers<[2], [1], [1], [2], [0, 0, 0, 1, 1, 2], [0], [0]>, precision = #tpu.contract_precision<fp32>} : vector<2x1x8xf32>, vector<2x8x32xf32>, vector<2x1x32xf32> -> vector<2x1x32xf32>
    "tpu.trace_stop"() : () -> ()
    %16 = vector.shape_cast %15 : vector<2x1x32xf32> to vector<2x32xf32>
    %17 = vector.shape_cast %14 : vector<2x1x1xf32> to vector<2x1xf32>
    %18 = vector.broadcast %17 : vector<2x1xf32> to vector<2x32xf32>
    %19 = arith.divf %16, %18 : vector<2x32xf32>
    %c0_9 = arith.constant 0 : index
    %c0_10 = arith.constant 0 : index
    %20 = vector.load %arg4[%c0_9, %c0_10] : memref<2x32xf32, #tpu.memory_space<vmem>>, vector<2x32xf32>
    tpu.vector_store %arg4[%c0_9, %c0_10], %19 {strides = array<i32>} : memref<2x32xf32, #tpu.memory_space<vmem>>, vector<2x32xf32>,
    return
  }
  func.func @transform_0(%arg0: i32) -> (i32, i32, i32) {
    %c0_i32 = arith.constant 0 : i32
    %c0_i32_0 = arith.constant 0 : i32
    %c0_i32_1 = arith.constant 0 : i32
    return %arg0, %c0_i32, %c0_i32_0 : i32, i32, i32
  }
  func.func @transform_1(%arg0: i32) -> (i32, i32, i32) {
    %c0_i32 = arith.constant 0 : i32
    %c0_i32_0 = arith.constant 0 : i32
    %c0_i32_1 = arith.constant 0 : i32
    %c0_i32_2 = arith.constant 0 : i32
    return %c0_i32, %c0_i32_0, %c0_i32_1 : i32, i32, i32
  }
  func.func @transform_2(%arg0: i32) -> i32 {
    %c0_i32 = arith.constant 0 : i32
    %c0_i32_0 = arith.constant 0 : i32
    return %c0_i32 : i32
  }
  func.func @transform_3(%arg0: i32) -> (i32, i32) {
    %c0_i32 = arith.constant 0 : i32
    %c0_i32_0 = arith.constant 0 : i32
    return %arg0, %c0_i32 : i32, i32
  }
}

</mosaic_0001>

<bundles_post_ra>
// kernel: tpu_custom_call.1
= control target key start
LH: loop header
LB: loop body
LE: loop exit
PB: predicated region body
PF: predicated region fallthrough
CT: control target
= control target key end

     0   :  { %9 = vsyncpa [#allocation4], 0  ;;  %s2316_s0 = inlined_call_operand.hbm [shape: f32[2,8,32], index: 0, kind: input, shape index: {}]   ;;  %s2317_s1 = inlined_call_operand.vmem [shape: f32[1,1,32], index: 1, kind: input, shape index: {}]   ;;  %s2318_s2 = inlined_call_operand.<no memory space> [shape: f32[1], index: 2, kind: input, shape index: {}]   ;;  %s2319_s3 = inlined_call_operand.hbm [shape: f32[2,32], index: 3, kind: output, shape index: {}]  }
   0x1   :  { %10 = vsyncpa [#allocation5], 0  ;;  %s2162_s12 = smov [#allocation3]   ;;  %s2114_s16 = scalar_lea.hbm %s2316_s0, 256 }
   0x2   :  { %s16_s13 = sshll.u32 %s2162_s12, 4  ;;  %p2115_p0 = scmp.ne.s32.totalorder %s2316_s0, %s2114_s16  ;;  %s17_s13 = int_to_ptr.vmem [resolvable:$true] %s16_s13 }
   0x3   :  { %p2118_p1 = scmp.lt.u32.totalorder %s2114_s16, %s2316_s0 }
   0x5   :  { %p2120_p2 = pnand %p2118_p1, %p2115_p0 }
   0x7   :  { %2123 = shalt.err (!%p2120_p2)
}
   0x8   :  { %s2124_s21 = scalar_lea.vmem %s17_s13, 256  ;;  %p2129_p4 = scmp.lt.s32.totalorder %s17_s13, %s17_s13 }
   0x9   :  { %p2125_p3 = scmp.ne.s32.totalorder %s17_s13, %s2124_s21  ;;  %p2130_p5 = scmp.lt.s32.totalorder %s2124_s21, %s2124_s21 }
   0xb   :  { %p2131_p6 = por %p2130_p5, %p2129_p4 }
   0xd   :  { %p2132_p7 = pnand %p2131_p6, %p2125_p3 }
   0xf   :  { %2135 = shalt.err (!%p2132_p7)
}
  0x10   :  { %s2163_s22 = smov 128   ;;  %s2164_s23 = smov 8  }
  0x11   :  { %22 = dma.hbm_to_vmem [thread:$0]  %s2316_s0, 256, %s17_s13, [#allocation4], %s2163_s22, %s2163_s22, %s2164_s23  }
  0x12   :  { %2158 = dma.done.wait [#allocation4], 256  }
  0x13   :  { %2159 = vsyncadd [#allocation4], 4294967040  ;;  %v2165_v0 = vmov 0.0   ;;  %vm2166_vm0 = vmmov 0   ;;  %vm35_vm1 = vcmask 261120   ;;  %v2206_v1 = vld [vmem:[#allocation3 + $0x8] sm:$0xff]  ;;  %v34_v22 = vstv %s2318_s2 }
  0x14   :  { %1968 = vmatprep.subr.mxu1 %v2165_v0  ;;  %1938 = vmatprep.subr.mxu0 %v2165_v0  ;;  %v33_v2 = vld [vmem:[%s2317_s1] sm:$0x1]  ;;  %v489_v5 = vsel %vm35_vm1, %v2206_v1, 0  ;;  %vm937_vm2 = vcmask 57344   ;;  %v2257_v31 = vand.u32 4294901760, %v2206_v1  ;;  %vm956_vm3 = vcmask 64512  }
  0x15   :  { %1940 = vmatprep.mubr.msk.f32.mxu0 %vm2166_vm0, %v2165_v0  ;;  %1970 = vmatprep.mubr.msk.f32.mxu1 %vm2166_vm0, %v2165_v0  ;;  %v2211_v3 = vld [vmem:[#allocation3] sm:$0xff]  ;;  %v37_v4 = vsel %vm35_vm1, %v33_v2, 0  ;;  %v492_v8 = vand.u32 4294901760, %v489_v5  ;;  %v1855_v63 = vlaneseq  ;;  %s2167_s2 = smov [#allocation6]   ;;  %vm1870_vm4 = vcmask 1041409  }
  0x16   :  { %v40_v6 = vsel %vm35_vm1, %v2211_v3, 0  ;;  %v108_v7 = vand.u32 4294901760, %v37_v4  ;;  %v2260_v32 = vand.u32 4294901760, %v2211_v3  ;;  %v1487_v39 = vsub.f32 %v2206_v1, %v2257_v31  ;;  %s1881_s28 = sshll.u32 %s2167_s2, 4  ;;  %s1882_s28 = int_to_ptr.vmem [resolvable:$true] %s1881_s28 }
  0x17   :  { %v43_v9 = vand.u32 4294901760, %v40_v6  ;;  %1969 = vmatpush3.xpose.msra.mxu1 %v492_v8  ;;  %v569_v10 = vsub.f32 %v489_v5, %v492_v8  ;;  %v1856_v1 = vshrl.u32 %v1855_v63, 7  ;;  %vm1873_vm5 = vcmask 254976   ;;  %s2136_s29 = scalar_lea.vmem %s1882_s28, 32  ;;  %p2141_p9 = scmp.lt.s32.totalorder %s1882_s28, %s1882_s28 }
  0x18   :  { %v109_v12 = vsub.f32 %v37_v4, %v108_v7  ;;  %1973 = vmatprep.subr.mxu1 %v2165_v0  ;;  %v1488_v43 = vand.u32 4294901760, %v1487_v39  ;;  %v1038_v44 = vsub.f32 %v2211_v3, %v2260_v32  ;;  %p2137_p8 = scmp.ne.s32.totalorder %s1882_s28, %s2136_s29  ;;  %p2142_p10 = scmp.lt.s32.totalorder %s2136_s29, %s2136_s29 }
  0x19   :  { %1939 = vmatpush3.xpose.msra.mxu0 %v43_v9  ;;  %v120_v11 = vsub.f32 %v40_v6, %v43_v9  ;;  %v570_v14 = vand.u32 4294901760, %v569_v10  ;;  %v1857_v3 = vsub.s32 0, %v1856_v1 }
  0x1a   :  { %1943 = vmatprep.subr.mxu0 %v2165_v0  ;;  %v110_v13 = vand.u32 4294901760, %v109_v12  ;;  %v1489_v50 = vsub.f32 %v1487_v39, %v1488_v43  ;;  %v1039_v51 = vand.u32 4294901760, %v1038_v44  ;;  %p2143_p11 = por %p2142_p10, %p2141_p9 }
  0x1b   :  { %v121_v15 = vand.u32 4294901760, %v120_v11  ;;  %v571_v17 = vsub.f32 %v569_v10, %v570_v14 }
  0x1c   :  { %v111_v16 = vsub.f32 %v109_v12, %v110_v13  ;;  %v1490_v56 = vand.u32 4294901760, %v1489_v50  ;;  %v1040_v57 = vsub.f32 %v1038_v44, %v1039_v51  ;;  %p2144_p12 = pnand %p2143_p11, %p2137_p8 }
  0x1d   :  { %v122_v18 = vsub.f32 %v120_v11, %v121_v15  ;;  %v572_v20 = vand.u32 4294901760, %v571_v17 }
  0x1e   :  { %v112_v19 = vand.u32 4294901760, %v111_v16  ;;  %v1041_v61 = vand.u32 4294901760, %v1040_v57 }
  0x1f   :  { %v123_v21 = vand.u32 4294901760, %v122_v18 }
  0x20   :  { %1941 = vmatmul.mubr.f32.vlgmr.msra.gmra.mrb[0].mxu0 %v112_v19  ;;  %1971 = vmatmul.mubr.f32.vlgmr.msra.gmra.mrb[0].mxu1 %v112_v19 }
  0x21   :  { %1974 = vmatpush3.xpose.msra.mxu1 %v572_v20  ;;  %1944 = vmatpush3.xpose.msra.mxu0 %v123_v21 }
  0x22   :  { %1945 = vmatprep.mubr.msk.f32.mxu0 %vm2166_vm0, %v2165_v0  ;;  %1975 = vmatprep.mubr.msk.f32.mxu1 %vm2166_vm0, %v2165_v0 }
  0x23   :  { %1978 = vmatprep.subr.mxu1 %v2165_v0  ;;  %1948 = vmatprep.subr.mxu0 %v2165_v0 }
  0x28   :  { %1946 = vmatmul.mubr.f32.vlgmr.msra.gmra.mrb[0].mxu0 %v108_v7  ;;  %1976 = vmatmul.mubr.f32.vlgmr.msra.gmra.mrb[0].mxu1 %v108_v7 }
  0x29   :  { %1979 = vmatpush3.xpose.msra.mxu1 %v569_v10  ;;  %1949 = vmatpush3.xpose.msra.mxu0 %v120_v11 }
  0x2a   :  { %1950 = vmatprep.mubr.msk.f32.mxu0 %vm2166_vm0, %v2165_v0  ;;  %1980 = vmatprep.mubr.msk.f32.mxu1 %vm2166_vm0, %v2165_v0 }
  0x2b   :  { %1983 = vmatprep.subr.mxu1 %v2165_v0  ;;  %1953 = vmatprep.subr.mxu0 %v2165_v0 }
  0x30   :  { %1951 = vmatmul.mubr.f32.vlgmr.msra.gmra.mrb[0].mxu0 %v109_v12  ;;  %1981 = vmatmul.mubr.f32.vlgmr.msra.gmra.mrb[0].mxu1 %v109_v12 }
  0x31   :  { %1984 = vmatpush3.xpose.msra.mxu1 %v492_v8  ;;  %1954 = vmatpush3.xpose.msra.mxu0 %v43_v9 }
  0x32   :  { %1955 = vmatprep.mubr.msk.f32.mxu0 %vm2166_vm0, %v2165_v0  ;;  %1985 = vmatprep.mubr.msk.f32.mxu1 %vm2166_vm0, %v2165_v0 }
  0x33   :  { %1988 = vmatprep.subr.mxu1 %v2165_v0  ;;  %1958 = vmatprep.subr.mxu0 %v2165_v0 }
  0x38   :  { %1956 = vmatmul.mubr.f32.vlgmr.msra.gmra.mrb[0].mxu0 %v110_v13  ;;  %1986 = vmatmul.mubr.f32.vlgmr.msra.gmra.mrb[0].mxu1 %v110_v13 }
  0x39   :  { %1989 = vmatpush3.xpose.msra.mxu1 %v570_v14  ;;  %1959 = vmatpush3.xpose.msra.mxu0 %v121_v15 }
  0x3a   :  { %1960 = vmatprep.mubr.msk.f32.mxu0 %vm2166_vm0, %v2165_v0  ;;  %1990 = vmatprep.mubr.msk.f32.mxu1 %vm2166_vm0, %v2165_v0 }
  0x3b   :  { %1993 = vmatprep.subr.mxu1 %v2165_v0  ;;  %1963 = vmatprep.subr.mxu0 %v2165_v0 }
  0x40   :  { %1961 = vmatmul.mubr.f32.vlgmr.msra.gmra.mrb[0].mxu0 %v108_v7  ;;  %1991 = vmatmul.mubr.f32.vlgmr.msra.gmra.mrb[0].mxu1 %v108_v7 }
  0x41   :  { %1994 = vmatpush3.xpose.msra.mxu1 %v492_v8  ;;  %1964 = vmatpush3.xpose.msra.mxu0 %v43_v9 }
  0x42   :  { %1965 = vmatprep.mubr.msk.f32.mxu0 %vm2166_vm0, %v2165_v0  ;;  %1995 = vmatprep.mubr.msk.f32.mxu1 %vm2166_vm0, %v2165_v0 }
  0x43   :  { %2028 = vmatprep.subr.mxu1 %v2165_v0  ;;  %1998 = vmatprep.subr.mxu0 %v2165_v0 }
  0x48   :  { %1966 = vmatmul.mubr.f32.vlgmr.msra.gmra.mrb[0].mxu0 %v108_v7  ;;  %1996 = vmatmul.mubr.f32.vlgmr.msra.gmra.mrb[0].mxu1 %v108_v7 }
  0x49   :  { %2030 = vmatprep.mubr.msk.f32.mxu1 %vm2166_vm0, %v2165_v0  ;;  %2000 = vmatprep.mubr.msk.f32.mxu0 %vm2166_vm0, %v2165_v0 }
  0x4a   :  { %2029 = vmatpush3.msra.mxu1 %v2257_v31  ;;  %1999 = vmatpush3.msra.mxu0 %v2260_v32 }
  0x4b   :  { %2033 = vmatprep.subr.mxu1 %v2165_v0  ;;  %2003 = vmatprep.subr.mxu0 %v2165_v0 }
 0x11b   :  { %v484_v23 = vpop.f32.mrb[0].mxu0  ;;  %v933_v24 = vpop.f32.mrb[0].mxu1 }
 0x11c   :  { %v2059_v25 = vadd.f32 %v933_v24, %v34_v22  ;;  %v1967_v26 = vpop.f32.mrb[1].mxu0  ;;  %v1997_v27 = vpop.f32.mrb[1].mxu1  ;;  %v2058_v28 = vadd.f32 %v484_v23, %v34_v22 }
 0x11e   :  { %v941_v29 = vsel %vm937_vm2, %v2059_v25, -inf  ;;  %v938_v30 = vsel %vm937_vm2, %v2058_v28, -inf }
 0x11f   :  { %942 = vmax.xlane.f32.xlu0 %v941_v29 }
 0x123   :  { %939 = vmax.xlane.f32.xlu0 %v938_v30 }
 0x1ac   :  { %v943_v33 = vpop.xlane.xlu0 %942 }
 0x1ad   :  { %v945_v34 = vsub.f32 %v2059_v25, %v943_v33 }
 0x1af   :  { %v948_v35 = vmul.f32 1.442695, %v945_v34 }
 0x1b0   :  { %v940_v36 = vpop.xlane.xlu0 %939 }
 0x1b1   :  { %2106 = vpow2.f32 %v948_v35  ;;  %v944_v37 = vsub.f32 %v2058_v28, %v940_v36 }
 0x1b3   :  { %v946_v38 = vmul.f32 1.442695, %v944_v37 }
 0x1b5   :  { %2108 = vpow2.f32 %v946_v38 }
 0x1bb   :  { %v2107_v40 = vpop.eup %2106 }
 0x1bc   :  { %v1407_v41 = vsel %vm956_vm3, %v2107_v40, 0  ;;  %v953_v42 = vsel %vm937_vm2, %v2107_v40, 0.0 }
 0x1bd   :  { %v1475_v45 = vand.u32 4294901760, %v1407_v41  ;;  %954 = vadd.xlane.f32.xlu1 %v953_v42 }
 0x1bf   :  { %v2109_v46 = vpop.eup %2108  ;;  %v1476_v47 = vsub.f32 %v1407_v41, %v1475_v45 }
 0x1c0   :  { %v958_v48 = vsel %vm956_vm3, %v2109_v46, 0  ;;  %v950_v49 = vsel %vm937_vm2, %v2109_v46, 0.0 }
 0x1c1   :  { %v1026_v52 = vand.u32 4294901760, %v958_v48  ;;  %951 = vadd.xlane.f32.xlu1 %v950_v49  ;;  %v1477_v53 = vand.u32 4294901760, %v1476_v47 }
 0x1c3   :  { %v1478_v54 = vsub.f32 %v1476_v47, %v1477_v53  ;;  %v1027_v55 = vsub.f32 %v958_v48, %v1026_v52 }
 0x1c5   :  { %v1479_v58 = vand.u32 4294901760, %v1478_v54  ;;  %v1028_v59 = vand.u32 4294901760, %v1027_v55 }
 0x1c7   :  { %2031 = vmatmul.mubr.f32.vlgmr.msra.gmra.mrb[2].mxu1 %v1479_v58  ;;  %v1029_v60 = vsub.f32 %v1027_v55, %v1028_v59 }
 0x1c8   :  { %2034 = vmatpush3.msra.mxu1 %v1490_v56  ;;  %2035 = vmatprep.mubr.msk.f32.mxu1 %vm2166_vm0, %v2165_v0 }
 0x1c9   :  { %v1030_v62 = vand.u32 4294901760, %v1029_v60  ;;  %2038 = vmatprep.subr.mxu1 %v2165_v0 }
 0x1cb   :  { %2001 = vmatmul.mubr.f32.vlgmr.msra.gmra.mrb[2].mxu0 %v1030_v62 }
 0x1cc   :  { %2004 = vmatpush3.msra.mxu0 %v1041_v61  ;;  %2005 = vmatprep.mubr.msk.f32.mxu0 %vm2166_vm0, %v2165_v0 }
 0x1cd   :  { %2008 = vmatprep.subr.mxu0 %v2165_v0 }
 0x1cf   :  { %2036 = vmatmul.mubr.f32.vlgmr.msra.gmra.mrb[2].mxu1 %v1475_v45 }
 0x1d0   :  { %2039 = vmatpush3.msra.mxu1 %v1487_v39  ;;  %2040 = vmatprep.mubr.msk.f32.mxu1 %vm2166_vm0, %v2165_v0 }
 0x1d1   :  { %2043 = vmatprep.subr.mxu1 %v2165_v0 }
 0x1d3   :  { %2006 = vmatmul.mubr.f32.vlgmr.msra.gmra.mrb[2].mxu0 %v1026_v52 }
 0x1d4   :  { %2009 = vmatpush3.msra.mxu0 %v1038_v44  ;;  %2010 = vmatprep.mubr.msk.f32.mxu0 %vm2166_vm0, %v2165_v0 }
 0x1d5   :  { %2013 = vmatprep.subr.mxu0 %v2165_v0 }
 0x1d7   :  { %2041 = vmatmul.mubr.f32.vlgmr.msra.gmra.mrb[2].mxu1 %v1476_v47 }
 0x1d8   :  { %2044 = vmatpush3.msra.mxu1 %v2257_v31  ;;  %2045 = vmatprep.mubr.msk.f32.mxu1 %vm2166_vm0, %v2165_v0 }
 0x1d9   :  { %2048 = vmatprep.subr.mxu1 %v2165_v0 }
 0x1db   :  { %2011 = vmatmul.mubr.f32.vlgmr.msra.gmra.mrb[2].mxu0 %v1027_v55 }
 0x1dc   :  { %2014 = vmatpush3.msra.mxu0 %v2260_v32  ;;  %2015 = vmatprep.mubr.msk.f32.mxu0 %vm2166_vm0, %v2165_v0 }
 0x1dd   :  { %2018 = vmatprep.subr.mxu0 %v2165_v0 }
 0x1df   :  { %2046 = vmatmul.mubr.f32.vlgmr.msra.gmra.mrb[2].mxu1 %v1477_v53 }
 0x1e0   :  { %2049 = vmatpush3.msra.mxu1 %v1488_v43  ;;  %2050 = vmatprep.mubr.msk.f32.mxu1 %vm2166_vm0, %v2165_v0 }
 0x1e1   :  { %2053 = vmatprep.subr.mxu1 %v2165_v0 }
 0x1e3   :  { %2016 = vmatmul.mubr.f32.vlgmr.msra.gmra.mrb[2].mxu0 %v1028_v59 }
 0x1e4   :  { %2019 = vmatpush3.msra.mxu0 %v1039_v51  ;;  %2020 = vmatprep.mubr.msk.f32.mxu0 %vm2166_vm0, %v2165_v0 }
 0x1e5   :  { %2023 = vmatprep.subr.mxu0 %v2165_v0 }
 0x1e7   :  { %2051 = vmatmul.mubr.f32.vlgmr.msra.gmra.mrb[2].mxu1 %v1475_v45 }
 0x1e8   :  { %2054 = vmatpush3.msra.mxu1 %v2257_v31  ;;  %2055 = vmatprep.mubr.msk.f32.mxu1 %vm2166_vm0, %v2165_v0 }
 0x1eb   :  { %2021 = vmatmul.mubr.f32.vlgmr.msra.gmra.mrb[2].mxu0 %v1026_v52 }
 0x1ec   :  { %2024 = vmatpush3.msra.mxu0 %v2260_v32  ;;  %2025 = vmatprep.mubr.msk.f32.mxu0 %vm2166_vm0, %v2165_v0 }
 0x1ef   :  { %2056 = vmatmul.mubr.f32.vlgmr.msra.gmra.mrb[2].mxu1 %v1475_v45 }
 0x1f3   :  { %2026 = vmatmul.mubr.f32.vlgmr.msra.gmra.mrb[2].mxu0 %v1026_v52 }
 0x24a   :  { %v955_v2 = vpop.xlane.xlu1 %954 }
 0x24b   :  { %v1862_v4 = vrot.slane %v955_v2, %v1857_v3 }
 0x24d   :  { %2110 = vrcp.f32 %v1862_v4 }
 0x24e   :  { %v952_v5 = vpop.xlane.xlu1 %951 }
 0x24f   :  { %v1858_v6 = vrot.slane %v952_v5, %v1857_v3 }
 0x251   :  { %2112 = vrcp.f32 %v1858_v6 }
 0x257   :  { %v2111_v7 = vpop.eup %2110 }
 0x25b   :  { %v2113_v11 = vpop.eup %2112 }
 0x2c2   :  { %v1851_v8 = vpop.f32.mrb[2].mxu1 }
 0x2c3   :  { %v1866_v9 = vmul.f32 %v2111_v7, %v1851_v8  ;;  %v2057_v10 = vpop.f32.mrb[3].mxu1 }
 0x2c5   :  { %v1869_v0 = vrot.slane %v1866_v9, 7 }
 0x2c6   :  { %v1402_v12 = vpop.f32.mrb[2].mxu0 }
 0x2c7   :  { %v1864_v13 = vmul.f32 %v2113_v11, %v1402_v12  ;;  %v2027_v14 = vpop.f32.mrb[3].mxu0 }
 0x2c9   :  { %v1871_v15 = vsel %vm1870_vm4, %v1869_v0, %v1864_v13 }
 0x2ca   :  { %1874 = vst.msk [vmem:[#allocation6] sm:$0x3] %vm1873_vm5, %v1871_v15 }
 0x2cb   :  { %2147 = shalt.err (!%p2144_p12)
}
 0x2cc   :  { %s2148_s5 = scalar_lea.hbm %s2319_s3, 32 }
 0x2cd   :  { %p2149_p13 = scmp.ne.s32.totalorder %s2319_s3, %s2148_s5  ;;  %p2152_p0 = scmp.lt.u32.totalorder %s2148_s5, %s2319_s3 }
 0x2cf   :  { %p2154_p1 = pnand %p2152_p0, %p2149_p13 }
 0x2d1   :  { %2157 = shalt.err (!%p2154_p1)
}
 0x2d2   :  { %1884 = dma.vmem_to_hbm [thread:$0]  %s1882_s28, 32, %s2319_s3, [#allocation5]  }
 0x2d3   :  { %2160 = dma.done.wait [#allocation5], 32  }
 0x2d4   :  { %2161 = vsyncadd [#allocation5], 4294967264 }
 0x2d5   :  { %1888 = vsyncpa [#allocation4], 1 }
 0x2d6   :  { %1889 = vsyncpa [#allocation5], 1 }

</bundles_post_ra>
